<compile_context>
chip_gen: v7x
topology: tpu7x:2x2x1
jax: 0.10.0
libtpu: 0.0.40
codegen_flags: <defaults>
</compile_context>

<pallas_src>
import functools

import jax
import jax.numpy as jnp
from jax.experimental import pallas as pl
from jax.experimental.pallas import tpu as pltpu

ALPHA = 0.8
GAMMA = 2.0

COLS = 512              # lane-dense slab width (multiple of 128)
MAX_TILE_ROWS = 1024    # up to 1024*512*4 B = 2 MiB per input tile (f32)
NUM_SLICES = 2          # leading "parallel" grid axis (both TCs on v7x)
SMALL_N_THRESHOLD = 65536  # below this, plain XLA reduction is faster


def _elementwise_bce(x_raw, t_raw, hard):
    """Element-wise binary cross entropy in f32 (PyTorch clamps logs at -100)."""
    x = x_raw.astype(jnp.float32)
    if hard:
        # Hard 0/1 targets: a single transcendental per element.
        if t_raw.dtype == jnp.bool_:
            t_pos = t_raw
        else:
            t_pos = t_raw.astype(jnp.float32) > 0.5
        p_sel = jnp.where(t_pos, x, 1.0 - x)
        return -jnp.maximum(jnp.log(p_sel), -100.0)
    # Soft targets: keep the exact two-log form.  NOTE: the -100 clamp must be
    # applied to each log BEFORE multiplying by t / (1-t) (padding exactness).
    t = t_raw.astype(jnp.float32)
    log_p = jnp.maximum(jnp.log(x), -100.0)
    log_1mp = jnp.maximum(jnp.log(1.0 - x), -100.0)
    return -(t * log_p + (1.0 - t) * log_1mp)


def _bce_partial_sum_kernel(x_ref, t_ref, partial_ref, acc_ref, *, hard):
    """Per-slice sum of element-wise BCE.

    Grid: (NUM_SLICES [parallel], steps [arbitrary reduction axis]).
    acc_ref is a small (8, COLS) f32 accumulator; the per-tile BCE is reduced
    over the leading axis with vreg-wise adds each step, and the single
    cross-lane reduction runs only on the final step.
    """
    j = pl.program_id(1)

    @pl.when(j == 0)
    def _():
        acc_ref[...] = jnp.zeros_like(acc_ref)

    bce = _elementwise_bce(x_ref[...], t_ref[...], hard)
    tr, c = bce.shape
    # Padded tail was filled with (x=1, t=1) -> contributes exactly 0; no mask.
    acc_ref[...] += bce.reshape(tr // 8, 8, c).sum(axis=0)

    @pl.when(j == pl.num_programs(1) - 1)
    def _():
        s = jnp.sum(acc_ref[...])
        partial_ref[...] = jnp.full(partial_ref.shape, s, dtype=jnp.float32)


def _round_up(x, m):
    return ((x + m - 1) // m) * m


def _bce_mean_pallas(x, t, hard):
    """Mean BCE over flat vectors x (probabilities) and t (targets) via Pallas."""
    n = x.shape[0]

    rows_needed = _round_up(n, COLS) // COLS
    tile_rows = min(MAX_TILE_ROWS, _round_up(rows_needed, 8))
    rows = _round_up(rows_needed, tile_rows * NUM_SLICES)
    n_pad = rows * COLS
    steps = rows // (tile_rows * NUM_SLICES)

    # Pad with (x=1, t=1): BCE contribution of padded elements is exactly 0
    # (clamped log(1-x) = -100 is multiplied by (1-t) = 0; log(x) = 0), so the
    # kernel needs no per-element mask.
    xp = jnp.pad(x, (0, n_pad - n), constant_values=1).reshape(rows, COLS)
    tp = jnp.pad(t, (0, n_pad - n), constant_values=1).reshape(rows, COLS)

    kernel = functools.partial(_bce_partial_sum_kernel, hard=hard)

    partials = pl.pallas_call(
        kernel,
        out_shape=jax.ShapeDtypeStruct((NUM_SLICES * 8, 128), jnp.float32),
        grid=(NUM_SLICES, steps),
        in_specs=[
            pl.BlockSpec((tile_rows, COLS), lambda c, j: (c * steps + j, 0)),
            pl.BlockSpec((tile_rows, COLS), lambda c, j: (c * steps + j, 0)),
        ],
        out_specs=pl.BlockSpec((8, 128), lambda c, j: (c, 0)),
        scratch_shapes=[pltpu.VMEM((8, COLS), jnp.float32)],
        compiler_params=pltpu.CompilerParams(
            dimension_semantics=("parallel", "arbitrary"),
            allow_input_fusion=[True, True],
        ),
    )(xp, tp)

    # One scalar per slice (each (8,128) output block is filled with its sum).
    total = jnp.sum(partials[::8, 0])
    return total / jnp.float32(n)


def _bce_mean_xla(x, t, hard):
    """Small-N fallback: fused XLA reduction (skips pallas_call setup cost)."""
    bce = _elementwise_bce(x, t, hard)
    return jnp.mean(bce)


def focal_loss(inputs, targets, alpha=ALPHA, gamma=GAMMA, *,
               hard_targets=None, min_pallas_elems=SMALL_N_THRESHOLD):
    """Pallas TPU implementation of FocalLoss.forward (returns a scalar).

    `inputs` are probabilities (as required by F.binary_cross_entropy).
    `hard_targets=True` enables the exact single-log fast path (valid only for
    0/1 labels); bool/int target dtypes enable it automatically.
    """
    x = inputs.reshape(-1)
    t = targets.reshape(-1)
    n = x.shape[0]

    if hard_targets is None:
        hard_targets = (jnp.issubdtype(targets.dtype, jnp.bool_)
                        or jnp.issubdtype(targets.dtype, jnp.integer))

    if n < min_pallas_elems:
        bce = _bce_mean_xla(x, t, hard_targets)
    else:
        bce = _bce_mean_pallas(x, t, hard_targets)

    bce_exp = jnp.exp(-bce)
    return alpha * (1.0 - bce_exp) ** gamma * bce


if __name__ == "__main__":
    key = jax.random.PRNGKey(0)
    k1, k2 = jax.random.split(key)

    # NCHW inputs: probabilities in (0,1) (F.binary_cross_entropy expects probs).
    logits = jax.random.normal(k1, (2, 4, 16, 16), dtype=jnp.float32)
    inputs = jax.nn.sigmoid(logits)
    targets = (jax.random.uniform(k2, (2, 4, 16, 16)) > 0.5).astype(jnp.float32)

    # Force the Pallas path (small test input) — soft-target (two-log) kernel.
    loss = jax.jit(
        functools.partial(focal_loss, min_pallas_elems=0)
    )(inputs, targets)
    jax.block_until_ready(loss)

    # Hard-label fast path (single log) on the same 0/1 targets.
    loss_hard = jax.jit(
        functools.partial(focal_loss, hard_targets=True, min_pallas_elems=0)
    )(inputs, targets)
    jax.block_until_ready(loss_hard)

    # Small-N XLA fallback path.
    loss_fallback = jax.jit(focal_loss)(inputs, targets)
    jax.block_until_ready(loss_fallback)

    # Pure-JAX reference check.
    p = inputs.reshape(-1)
    t = targets.reshape(-1)
    bce_ref = jnp.mean(-(t * jnp.maximum(jnp.log(p), -100.0)
                         + (1.0 - t) * jnp.maximum(jnp.log(1.0 - p), -100.0)))
    ref = ALPHA * (1.0 - jnp.exp(-bce_ref)) ** GAMMA * bce_ref

    assert jnp.allclose(loss, ref, rtol=1e-5, atol=1e-6), (loss, ref)
    assert jnp.allclose(loss_hard, ref, rtol=1e-5, atol=1e-6), (loss_hard, ref)
    assert jnp.allclose(loss_fallback, ref, rtol=1e-5, atol=1e-6), (loss_fallback, ref)

    print("KERNEL_OK")
</pallas_src>

<mosaic_0001>
module attributes {stable_mosaic.version = 11 : i64} {
  func.func @_bce_partial_sum_kernel(%arg0: i32, %arg1: i32, %arg2: memref<8x512xf32, #tpu.memory_space<vmem>>, %arg3: memref<8x512xf32, #tpu.memory_space<vmem>>, %arg4: memref<8x128xf32, #tpu.memory_space<vmem>>, %arg5: memref<8x512xf32, #tpu.memory_space<vmem>>) attributes {dimension_semantics = [#tpu.dimension_semantics<parallel>, #tpu.dimension_semantics<arbitrary>], iteration_bounds = array<i64: 2, 1>, scalar_prefetch = 0 : i64, scratch_operands = 1 : i64, tpu.core_type = #tpu.core_type<tc>, window_params = [{transform_indices = @transform_0, window_bounds = array<i64: 8, 512>}, {transform_indices = @transform_1, window_bounds = array<i64: 8, 512>}, {transform_indices = @transform_2, window_bounds = array<i64: 8, 128>}]} {
    %c0_i32 = arith.constant 0 : i32
    %0 = arith.cmpi eq, %arg1, %c0_i32 : i32
    %1 = arith.extui %0 : i1 to i32
    %c0_i32_0 = arith.constant 0 : i32
    %2 = arith.cmpi ne, %1, %c0_i32_0 : i32
    scf.if %2 {
      %cst_15 = arith.constant 0.000000e+00 : f32
      %28 = vector.broadcast %cst_15 : f32 to vector<8x512xf32>
      %c0_16 = arith.constant 0 : index
      %c0_17 = arith.constant 0 : index
      %29 = vector.load %arg5[%c0_16, %c0_17] : memref<8x512xf32, #tpu.memory_space<vmem>>, vector<8x512xf32>
      tpu.vector_store %arg5[%c0_16, %c0_17], %28 {strides = array<i32>} : memref<8x512xf32, #tpu.memory_space<vmem>>, vector<8x512xf32>,
    } else {
    }
    %c0 = arith.constant 0 : index
    %c0_1 = arith.constant 0 : index
    %3 = vector.load %arg2[%c0, %c0_1] : memref<8x512xf32, #tpu.memory_space<vmem>>, vector<8x512xf32>
    %c0_2 = arith.constant 0 : index
    %c0_3 = arith.constant 0 : index
    %4 = vector.load %arg3[%c0_2, %c0_3] : memref<8x512xf32, #tpu.memory_space<vmem>>, vector<8x512xf32>
    %5 = math.log %3 : vector<8x512xf32>
    %cst = arith.constant -1.000000e+02 : f32
    %6 = vector.broadcast %cst : f32 to vector<8x512xf32>
    %7 = arith.maximumf %5, %6 : vector<8x512xf32>
    %cst_4 = arith.constant 1.000000e+00 : f32
    %8 = vector.broadcast %cst_4 : f32 to vector<8x512xf32>
    %9 = arith.subf %8, %3 : vector<8x512xf32>
    %10 = math.log %9 : vector<8x512xf32>
    %cst_5 = arith.constant -1.000000e+02 : f32
    %11 = vector.broadcast %cst_5 : f32 to vector<8x512xf32>
    %12 = arith.maximumf %10, %11 : vector<8x512xf32>
    %13 = arith.mulf %4, %7 : vector<8x512xf32>
    %cst_6 = arith.constant 1.000000e+00 : f32
    %14 = vector.broadcast %cst_6 : f32 to vector<8x512xf32>
    %15 = arith.subf %14, %4 : vector<8x512xf32>
    %16 = arith.mulf %15, %12 : vector<8x512xf32>
    %17 = arith.addf %13, %16 : vector<8x512xf32>
    %cst_7 = arith.constant 0.000000e+00 : f32
    %18 = vector.broadcast %cst_7 : f32 to vector<8x512xf32>
    %19 = arith.subf %18, %17 : vector<8x512xf32>
    %c0_8 = arith.constant 0 : index
    %c0_9 = arith.constant 0 : index
    %20 = vector.load %arg5[%c0_8, %c0_9] : memref<8x512xf32, #tpu.memory_space<vmem>>, vector<8x512xf32>
    %21 = vector.shape_cast %19 : vector<8x512xf32> to vector<1x8x512xf32>
    %cst_10 = arith.constant dense<0.000000e+00> : vector<8x512xf32>
    %22 = vector.multi_reduction <add>, %21, %cst_10 [0] : vector<1x8x512xf32> to vector<8x512xf32>
    %23 = arith.addf %20, %22 : vector<8x512xf32>
    %c0_11 = arith.constant 0 : index
    %c0_12 = arith.constant 0 : index
    %24 = vector.load %arg5[%c0_11, %c0_12] : memref<8x512xf32, #tpu.memory_space<vmem>>, vector<8x512xf32>
    tpu.vector_store %arg5[%c0_11, %c0_12], %23 {strides = array<i32>} : memref<8x512xf32, #tpu.memory_space<vmem>>, vector<8x512xf32>,
    %c0_i32_13 = arith.constant 0 : i32
    %25 = arith.cmpi eq, %arg1, %c0_i32_13 : i32
    %26 = arith.extui %25 : i1 to i32
    %c0_i32_14 = arith.constant 0 : i32
    %27 = arith.cmpi ne, %26, %c0_i32_14 : i32
    scf.if %27 {
      %c0_15 = arith.constant 0 : index
      %c0_16 = arith.constant 0 : index
      %28 = vector.load %arg5[%c0_15, %c0_16] : memref<8x512xf32, #tpu.memory_space<vmem>>, vector<8x512xf32>
      %29 = vector.shape_cast %28 : vector<8x512xf32> to vector<1x8x512xf32>
      %cst_17 = arith.constant dense<0.000000e+00> : vector<1xf32>
      %30 = vector.multi_reduction <add>, %29, %cst_17 [1, 2] : vector<1x8x512xf32> to vector<1xf32>
      %31 = vector.shape_cast %30 : vector<1xf32> to vector<1x1x1xf32>
      %32 = vector.extract %31[0, 0, 0] : f32 from vector<1x1x1xf32>
      %33 = vector.broadcast %32 : f32 to vector<8x128xf32>
      %c0_18 = arith.constant 0 : index
      %c0_19 = arith.constant 0 : index
      %34 = vector.load %arg4[%c0_18, %c0_19] : memref<8x128xf32, #tpu.memory_space<vmem>>, vector<8x128xf32>
      tpu.vector_store %arg4[%c0_18, %c0_19], %33 {strides = array<i32>} : memref<8x128xf32, #tpu.memory_space<vmem>>, vector<8x128xf32>,
    } else {
    }
    return
  }
  func.func @transform_0(%arg0: i32, %arg1: i32) -> (i32, i32) {
    %c1_i32 = arith.constant 1 : i32
    %0 = arith.muli %arg0, %c1_i32 : i32
    %1 = arith.addi %0, %arg1 : i32
    %c0_i32 = arith.constant 0 : i32
    %c0_i32_0 = arith.constant 0 : i32
    return %1, %c0_i32 : i32, i32
  }
  func.func @transform_1(%arg0: i32, %arg1: i32) -> (i32, i32) {
    %c1_i32 = arith.constant 1 : i32
    %0 = arith.muli %arg0, %c1_i32 : i32
    %1 = arith.addi %0, %arg1 : i32
    %c0_i32 = arith.constant 0 : i32
    %c0_i32_0 = arith.constant 0 : i32
    return %1, %c0_i32 : i32, i32
  }
  func.func @transform_2(%arg0: i32, %arg1: i32) -> (i32, i32) {
    %c0_i32 = arith.constant 0 : i32
    %c0_i32_0 = arith.constant 0 : i32
    return %arg0, %c0_i32 : i32, i32
  }
}

</mosaic_0001>

<bundles_post_ra>
// kernel: focal_loss.1
= control target key start
LH: loop header
LB: loop body
LE: loop exit
PB: predicated region body
PF: predicated region fallthrough
CT: control target
= control target key end

     0   :  { %s457_s9 = smov 0   ;;  %s459_s10 = smov 0   ;;  %s497_s0 = inlined_call_operand.vmem [shape: f32[16,512], index: 0, kind: input, shape index: {}]   ;;  %s498_s1 = inlined_call_operand.vmem [shape: f32[16,512], index: 1, kind: input, shape index: {}]   ;;  %s499_s2 = inlined_call_operand.vmem [shape: f32[16,128], index: 2, kind: output, shape index: {}]  }
   0x1   :  { %s461_s11 = smov 0  }
   0x2 LB: > { %s24_s12 = sadd.s32 1, %s436_s10  ;;  %p366_p0 = scmp.ge.s32.totalorder %s440_s11, 1  ;;  %s440_s11 = sphi %s461_s11, %s12_s11   ;;  %s436_s10 = sphi %s459_s10, %s501_s10   ;;  %s432_s9 = sphi %s457_s9, %s500_s9  }
   0x3   : > { %p26_p1 = scmp.ge.s32.totalorder %s24_s12, 2  ;;  %p142_p2 = scmp.lt.s32.totalorder %s440_s11, 3 }
   0x5   : > { %s503_s12 = smov (%p26_p1, %s24_s12), 0  ;;  %p143_p3 = pnand %p366_p0, %p142_p2 }
   0x6   : > { %p171_p4 = scmp.lt.s32.totalorder (!%p143_p3), %s432_s9, 1 }
   0x7   : > { %146 = sbr.rel (%p143_p3) target bundleno = 256 (0x100), region = 28 }
   0xe   : > { %s505_s9 = smov (!%p171_p4, %s432_s9), 1 }
   0xf   : > { %s374_s13 = sshll.u32 %s505_s9, 5  ;;  %s371_s20 = sshll.u32 %s505_s9, 3 }
  0x10   : > { %s175_s16 = scalar_lea.vmem %s497_s0, %s374_s13  ;;  %s182_s19 = scalar_lea.vmem %s498_s1, %s374_s13 }
  0x11   : > { %v196_v0 = vld [vmem:[%s175_s16] sm:$0xff]  ;;  %v197_v1 = vld [vmem:[%s175_s16 + $0x8] sm:$0xff]  ;;  %v198_v2 = vld [vmem:[%s175_s16 + $0x10] sm:$0xff]  ;;  %s187_s23 = scalar_lea.vmem %s499_s2, %s371_s20 }
  0x12   : > { %v199_v3 = vld [vmem:[%s175_s16 + $0x18] sm:$0xff]  ;;  %402 = vlog2.f32 %v196_v0  ;;  %v216_v4 = vsub.f32 1.0, %v196_v0  ;;  %v217_v5 = vsub.f32 1.0, %v197_v1  ;;  %v218_v6 = vsub.f32 1.0, %v198_v2  ;;  %v200_v12 = vld [vmem:[%s182_s19] sm:$0xff]  ;;  %v201_v15 = vld [vmem:[%s182_s19 + $0x8] sm:$0xff] }
  0x13   : > { %404 = vlog2.f32 %v197_v1  ;;  %v219_v7 = vsub.f32 1.0, %v199_v3  ;;  %v202_v19 = vld [vmem:[%s182_s19 + $0x10] sm:$0xff]  ;;  %v203_v23 = vld [vmem:[%s182_s19 + $0x18] sm:$0xff]  ;;  %v236_v26 = vsub.f32 1.0, %v200_v12  ;;  %v237_v30 = vsub.f32 1.0, %v201_v15 }
  0x14   : > { %406 = vlog2.f32 %v198_v2  ;;  %v238_v35 = vsub.f32 1.0, %v202_v19  ;;  %v239_v39 = vsub.f32 1.0, %v203_v23 }
  0x15   : > { %408 = vlog2.f32 %v199_v3 }
  0x16   : > { %410 = vlog2.f32 %v216_v4 }
  0x17   : > { %412 = vlog2.f32 %v217_v5 }
  0x18   : > { %414 = vlog2.f32 %v218_v6 }
  0x19   : > { %416 = vlog2.f32 %v219_v7 }
  0x1c   : > { %v403_v8 = vpop.eup %402 }
  0x1d   : > { %v405_v9 = vpop.eup %404  ;;  %v205_v10 = vmul.f32 0.6931472, %v403_v8 }
  0x1e   : > { %v407_v11 = vpop.eup %406  ;;  %v207_v13 = vmul.f32 0.6931472, %v405_v9 }
  0x1f   : > { %v409_v14 = vpop.eup %408  ;;  %v209_v16 = vmul.f32 0.6931472, %v407_v11  ;;  %v212_v17 = vmax.f32 %v205_v10, -100.0 }
  0x20   : > { %v411_v18 = vpop.eup %410  ;;  %v211_v20 = vmul.f32 0.6931472, %v409_v14  ;;  %v213_v21 = vmax.f32 %v207_v13, -100.0 }
  0x21   : > { %v413_v22 = vpop.eup %412  ;;  %v214_v24 = vmax.f32 %v209_v16, -100.0  ;;  %v221_v25 = vmul.f32 0.6931472, %v411_v18  ;;  %v232_v34 = vmul.f32 %v212_v17, %v200_v12 }
  0x22   : > { %v415_v27 = vpop.eup %414  ;;  %v215_v28 = vmax.f32 %v211_v20, -100.0  ;;  %v223_v29 = vmul.f32 0.6931472, %v413_v22  ;;  %v233_v38 = vmul.f32 %v213_v21, %v201_v15 }
  0x23   : > { %v417_v31 = vpop.eup %416  ;;  %v225_v32 = vmul.f32 0.6931472, %v415_v27  ;;  %v228_v33 = vmax.f32 %v221_v25, -100.0  ;;  %v234_v41 = vmul.f32 %v214_v24, %v202_v19 }
  0x24   : > { %v227_v36 = vmul.f32 0.6931472, %v417_v31  ;;  %v229_v37 = vmax.f32 %v223_v29, -100.0  ;;  %v235_v44 = vmul.f32 %v215_v28, %v203_v23 }
  0x25   : > { %v230_v40 = vmax.f32 %v225_v32, -100.0  ;;  %v240_v42 = vmul.f32 %v236_v26, %v228_v33 }
  0x26   : > { %v231_v43 = vmax.f32 %v227_v36, -100.0  ;;  %v241_v45 = vmul.f32 %v237_v30, %v229_v37 }
  0x27   : > { %v242_v46 = vmul.f32 %v238_v35, %v230_v40  ;;  %v244_v47 = vadd.f32 %v240_v42, %v232_v34 }
  0x28   : > { %v243_v48 = vmul.f32 %v239_v39, %v231_v43  ;;  %v245_v49 = vadd.f32 %v241_v45, %v233_v38 }
  0x29   : > { %v246_v50 = vadd.f32 %v242_v46, %v234_v41  ;;  %v248_v51 = vsub.f32 0.0, %v244_v47 }
  0x2a   : > { %v247_v52 = vadd.f32 %v243_v48, %v235_v44  ;;  %v249_v53 = vsub.f32 0.0, %v245_v49 }
  0x2b   : > { %v250_v54 = vsub.f32 0.0, %v246_v50 }
  0x2c   : > { %v251_v55 = vsub.f32 0.0, %v247_v52  ;;  %v275_v56 = vadd.f32 %v249_v53, %v248_v51 }
  0x2e   : > { %v276_v57 = vadd.f32 %v275_v56, %v250_v54 }
  0x30   : > { %v277_v58 = vadd.f32 %v276_v57, %v251_v55 }
  0x32   : > { %278 = vadd.xlane.f32.xlu0 %v277_v58 }
  0xbf   : > { %v279_v59 = vpop.xlane.xlu0 %278 }
  0xc0   : > { %v280_v60 = vrot.slane %v279_v59, 4 }
  0xc2   : > { %v281_v61 = vadd.f32 %v280_v60, %v279_v59 }
  0xc4   : > { %v282_v62 = vrot.slane %v281_v61, 2 }
  0xc6   : > { %v283_v63 = vadd.f32 %v282_v62, %v281_v61 }
  0xc8   : > { %v284_v0 = vrot.slane %v283_v63, 1 }
  0xca   : > { %v285_v1 = vadd.f32 %v284_v0, %v283_v63 }
  0xcc   : > { %376 = vpush %v285_v1 }
  0xfd   : > { %s377_s24 = spop %376 }
  0xfe   : > { %v287_v2 = vstv %s377_s24 }
  0xff   : > { %288 = vst [vmem:[%s187_s23] sm:$0xff] %v287_v2 }
 0x100 PF: > { %s12_s11 = sadd.s32 1, %s440_s11   ;;  %s500_s9 = smov %s436_s10 }
 0x101   : > { %p9_p5 = scmp.ge.s32.totalorder %s12_s11, 4   ;;  %s501_s10 = smov %s503_s12 }
 0x103   :  { %11 = sbr.rel (!%p9_p5) target bundleno = 2 (0x2), region = 69 }

</bundles_post_ra>
